<compile_context>
chip_gen: v7x
topology: tpu7x:2x2x1
jax: 0.10.0
libtpu: 0.0.40
codegen_flags: <defaults>
</compile_context>

<pallas_src>
import jax
import jax.numpy as jnp
from jax import lax
from jax.experimental import pallas as pl
from jax.experimental.pallas import tpu as pltpu


# ----------------------------------------------------------------------------
# Kernels
# ----------------------------------------------------------------------------
def _kernel_acc_in_out(x_ref, w_ref, b_ref, o_ref):
    """f32 output: accumulate directly into the resident output block."""
    k = pl.program_id(2)

    @pl.when(k == 0)
    def _():
        o_ref[...] = jnp.zeros_like(o_ref)

    # (tm, tk) x (tn, tk) contracted on dim 1 of both  ==  x @ W^T on the MXU.
    o_ref[...] += lax.dot_general(
        x_ref[...], w_ref[...],
        dimension_numbers=(((1,), (1,)), ((), ())),
        preferred_element_type=jnp.float32,
    )

    @pl.when(k == pl.num_programs(2) - 1)
    def _():
        o_ref[...] = jnp.maximum(o_ref[...] + b_ref[...].astype(jnp.float32), 0.0)


def _kernel_acc_scratch(x_ref, w_ref, b_ref, o_ref, acc_ref):
    """Narrow output dtypes (e.g. bf16): f32 VMEM accumulator scratch."""
    k = pl.program_id(2)

    @pl.when(k == 0)
    def _():
        acc_ref[...] = jnp.zeros_like(acc_ref)

    acc_ref[...] += lax.dot_general(
        x_ref[...], w_ref[...],
        dimension_numbers=(((1,), (1,)), ((), ())),
        preferred_element_type=jnp.float32,
    )

    @pl.when(k == pl.num_programs(2) - 1)
    def _():
        o_ref[...] = jnp.maximum(
            acc_ref[...] + b_ref[...].astype(jnp.float32), 0.0
        ).astype(o_ref.dtype)


# ----------------------------------------------------------------------------
# Tiling helpers
# ----------------------------------------------------------------------------
def _round_up(a, b):
    return ((a + b - 1) // b) * b


def _sublane_multiple(dtype):
    # Sub-32-bit dtypes pack along sublanes: bf16 -> 16 rows, int8/fp8 -> 32.
    return {4: 8, 2: 16, 1: 32}.get(jnp.dtype(dtype).itemsize, 8)


def _largest_aligned_divisor(total, upper, align):
    """Largest multiple of `align` that divides `total` and is <= upper."""
    upper = max(align, min(upper, total))
    best = align
    for d in range(align, upper + 1, align):
        if total % d == 0:
            best = d
    return best


def _default_tiles(dtype):
    """Per-generation default tiles and scoped-VMEM limit."""
    try:
        info = pltpu.get_tpu_info()
        vmem_cap = int(getattr(info, "vmem_capacity_bytes", 128 << 20))
    except Exception:
        vmem_cap = 128 << 20
    if vmem_cap <= (64 << 20):
        # v7x-class: 64 MiB VMEM per TensorCore -> keep the double-buffered
        # footprint comfortably under half of it.
        tm, tn, tk = 512, 512, 1024
    else:
        # v5e / v6e: 128 MiB physical VMEM.  Bigger tiles cut weight
        # re-streaming over M; scoped limit is raised explicitly below.
        tm, tn, tk = 512, 1024, 1024
    if jnp.dtype(dtype).itemsize < 4:
        tk *= 2  # narrow inputs halve traffic -> deeper K per grid step
    vmem_limit = min(int(0.75 * vmem_cap), 96 << 20)
    return tm, tn, tk, vmem_limit


# ----------------------------------------------------------------------------
# Wrapper
# ----------------------------------------------------------------------------
def hidden_layer(x, weight, bias, *, tile_m=None, tile_n=None, tile_k=None):
    """Compute ReLU(x @ weight.T + bias) with a Pallas TPU kernel.

    x:      (M, K)
    weight: (N, K)   (PyTorch nn.Linear layout — never transposed in HBM)
    bias:   (N,)
    """
    M, K = x.shape
    N, K2 = weight.shape
    assert K == K2, "weight inner dim must match x feature dim"

    out_dtype = x.dtype
    sm = _sublane_multiple(x.dtype)

    dtm, dtn, dtk, vmem_limit = _default_tiles(x.dtype)
    tm0 = _round_up(tile_m or dtm, sm)
    tn0 = _round_up(tile_n or dtn, 128)
    tk0 = _round_up(tile_k or dtk, 128)

    # Pad to TPU-friendly shapes (M -> sublane multiple, K/N -> 128).
    Mp = _round_up(M, sm)
    Kp = _round_up(K, 128)
    Np = _round_up(N, 128)

    # Snap tiles to aligned divisors of the padded dims (no extra padding).
    tm = _largest_aligned_divisor(Mp, min(tm0, Mp), sm)
    tn = _largest_aligned_divisor(Np, min(tn0, Np), 128)
    tk = _largest_aligned_divisor(Kp, min(tk0, Kp), 128)

    # Keep both v7x TensorCores busy: make the parallel (i, j) grid >= 2
    # blocks when the problem is big enough to split without breaking
    # 128 / sublane alignment.
    if (Mp // tm) * (Np // tn) < 2:
        if Np >= 2 * 128:
            tn = _largest_aligned_divisor(Np, Np // 2, 128)
        elif Mp >= 2 * sm:
            tm = _largest_aligned_divisor(Mp, Mp // 2, sm)

    # TODO(synk): for production, pre-pad weight/bias once at model init so the
    # per-call jnp.pad HBM copy below only ever touches the activations.
    if (Mp, Kp) != (M, K):
        x = jnp.pad(x, ((0, Mp - M), (0, Kp - K)))
    if (Np, Kp) != (N, K):
        weight = jnp.pad(weight, ((0, Np - N), (0, Kp - K)))
    if Np != N:
        bias = jnp.pad(bias, (0, Np - N))
    b2 = bias.reshape(1, Np)

    grid = (Mp // tm, Np // tn, Kp // tk)

    acc_in_out = out_dtype == jnp.float32
    if acc_in_out:
        kernel = _kernel_acc_in_out
        scratch = []
    else:
        kernel = _kernel_acc_scratch
        scratch = [pltpu.VMEM((tm, tn), jnp.float32)]

    elt = jnp.dtype(x.dtype).itemsize
    cost = pl.CostEstimate(
        flops=2 * Mp * Np * Kp,
        bytes_accessed=(Mp * Kp + Np * Kp + Np) * elt
        + Mp * Np * jnp.dtype(out_dtype).itemsize,
        transcendentals=0,
    )

    out = pl.pallas_call(
        kernel,
        out_shape=jax.ShapeDtypeStruct((Mp, Np), out_dtype),
        grid_spec=pltpu.PrefetchScalarGridSpec(
            num_scalar_prefetch=0,
            grid=grid,
            in_specs=[
                pl.BlockSpec((tm, tk), lambda i, j, k: (i, k)),   # x tile
                pl.BlockSpec((tn, tk), lambda i, j, k: (j, k)),   # weight tile (N,K layout)
                pl.BlockSpec((1, tn), lambda i, j, k: (0, j)),    # bias tile
            ],
            out_specs=pl.BlockSpec((tm, tn), lambda i, j, k: (i, j)),
            scratch_shapes=scratch,
        ),
        compiler_params=pltpu.CompilerParams(
            dimension_semantics=("parallel", "parallel", "arbitrary"),
            vmem_limit_bytes=vmem_limit,
        ),
        cost_estimate=cost,
    )(x, weight, b2)

    if (Mp, Np) != (M, N):
        out = out[:M, :N]
    return out


def hidden_layer_ref(x, weight, bias):
    return jnp.maximum(x @ weight.T + bias, 0.0)


# ----------------------------------------------------------------------------
# Self-test
# ----------------------------------------------------------------------------
if __name__ == "__main__":
    key = jax.random.PRNGKey(0)
    k_x, k_w, k_b = jax.random.split(key, 3)

    # --- HiddenLayer(input_size=32, output_size=32) on a batch of 8 ---------
    batch, input_size, output_size = 8, 32, 32
    x = jax.random.normal(k_x, (batch, input_size), dtype=jnp.float32)
    bound = 1.0 / (input_size ** 0.5)   # mimics nn.Linear's uniform init
    weight = jax.random.uniform(k_w, (output_size, input_size),
                                minval=-bound, maxval=bound, dtype=jnp.float32)
    bias = jax.random.uniform(k_b, (output_size,),
                              minval=-bound, maxval=bound, dtype=jnp.float32)

    out = jax.block_until_ready(hidden_layer(x, weight, bias))
    ref = hidden_layer_ref(x, weight, bias)
    assert out.shape == (batch, output_size)
    assert jnp.allclose(out, ref, atol=1e-5, rtol=1e-5)

    # --- non-aligned shape: exercises padding + multi-block parallel grid ---
    M2, K2, N2 = 300, 400, 520
    x2 = jax.random.normal(k_x, (M2, K2), dtype=jnp.float32)
    w2 = jax.random.normal(k_w, (N2, K2), dtype=jnp.float32) * 0.05
    b2 = jax.random.normal(k_b, (N2,), dtype=jnp.float32) * 0.05
    out2 = jax.block_until_ready(hidden_layer(x2, w2, b2))
    assert out2.shape == (M2, N2)
    assert jnp.allclose(out2, hidden_layer_ref(x2, w2, b2), atol=1e-3, rtol=1e-3)

    # --- bf16 path: f32 scratch accumulator, 16-row sublane packing ---------
    M3, K3, N3 = 64, 256, 384
    x3 = jax.random.normal(k_x, (M3, K3), dtype=jnp.float32).astype(jnp.bfloat16)
    w3 = (jax.random.normal(k_w, (N3, K3), dtype=jnp.float32) * 0.05).astype(jnp.bfloat16)
    b3 = (jax.random.normal(k_b, (N3,), dtype=jnp.float32) * 0.05).astype(jnp.bfloat16)
    out3 = jax.block_until_ready(hidden_layer(x3, w3, b3))
    ref3 = hidden_layer_ref(x3.astype(jnp.float32), w3.astype(jnp.float32),
                            b3.astype(jnp.float32))
    assert out3.shape == (M3, N3)
    assert out3.dtype == jnp.bfloat16
    assert jnp.allclose(out3.astype(jnp.float32), ref3, atol=0.1, rtol=0.1)

    print("KERNEL_OK")
</pallas_src>

<mosaic_0001>
module attributes {stable_mosaic.version = 11 : i64} {
  func.func @_kernel_acc_in_out(%arg0: i32, %arg1: i32, %arg2: i32, %arg3: memref<8x128xf32, #tpu.memory_space<vmem>>, %arg4: memref<128x128xf32, #tpu.memory_space<vmem>>, %arg5: memref<1x128xf32, #tpu.memory_space<vmem>>, %arg6: memref<8x128xf32, #tpu.memory_space<vmem>>) attributes {dimension_semantics = [#tpu.dimension_semantics<parallel>, #tpu.dimension_semantics<parallel>, #tpu.dimension_semantics<arbitrary>], iteration_bounds = array<i64: 1, 1, 1>, scalar_prefetch = 0 : i64, scratch_operands = 0 : i64, tpu.core_type = #tpu.core_type<tc>, window_params = [{transform_indices = @transform_0, window_bounds = array<i64: 8, 128>}, {transform_indices = @transform_1, window_bounds = array<i64: 128, 128>}, {transform_indices = @transform_2, window_bounds = array<i64: 1, 128>}, {transform_indices = @transform_3, window_bounds = array<i64: 8, 128>}]} {
    %c0_i32 = arith.constant 0 : i32
    %0 = arith.cmpi eq, %arg2, %c0_i32 : i32
    %1 = arith.extui %0 : i1 to i32
    %c0_i32_0 = arith.constant 0 : i32
    %2 = arith.cmpi ne, %1, %c0_i32_0 : i32
    scf.if %2 {
      %cst_10 = arith.constant 0.000000e+00 : f32
      %12 = vector.broadcast %cst_10 : f32 to vector<8x128xf32>
      %c0_11 = arith.constant 0 : index
      %c0_12 = arith.constant 0 : index
      %13 = vector.load %arg6[%c0_11, %c0_12] : memref<8x128xf32, #tpu.memory_space<vmem>>, vector<8x128xf32>
      tpu.vector_store %arg6[%c0_11, %c0_12], %12 {strides = array<i32>} : memref<8x128xf32, #tpu.memory_space<vmem>>, vector<8x128xf32>,
    } else {
    }
    %c0 = arith.constant 0 : index
    %c0_1 = arith.constant 0 : index
    %3 = vector.load %arg6[%c0, %c0_1] : memref<8x128xf32, #tpu.memory_space<vmem>>, vector<8x128xf32>
    %c0_2 = arith.constant 0 : index
    %c0_3 = arith.constant 0 : index
    %4 = vector.load %arg3[%c0_2, %c0_3] : memref<8x128xf32, #tpu.memory_space<vmem>>, vector<8x128xf32>
    %c0_4 = arith.constant 0 : index
    %c0_5 = arith.constant 0 : index
    %5 = vector.load %arg4[%c0_4, %c0_5] : memref<128x128xf32, #tpu.memory_space<vmem>>, vector<128x128xf32>
    %cst = arith.constant dense<0.000000e+00> : vector<8x128xf32>
    %6 = tpu.matmul %4, %5, %cst {dimension_numbers = #tpu.dot_dimension_numbers<[1], [1], [0], [0], [0, 0, 1, 0], [], []>} : vector<8x128xf32>, vector<128x128xf32>, vector<8x128xf32> -> vector<8x128xf32>
    %7 = arith.addf %3, %6 : vector<8x128xf32>
    %c0_6 = arith.constant 0 : index
    %c0_7 = arith.constant 0 : index
    %8 = vector.load %arg6[%c0_6, %c0_7] : memref<8x128xf32, #tpu.memory_space<vmem>>, vector<8x128xf32>
    tpu.vector_store %arg6[%c0_6, %c0_7], %7 {strides = array<i32>} : memref<8x128xf32, #tpu.memory_space<vmem>>, vector<8x128xf32>,
    %c0_i32_8 = arith.constant 0 : i32
    %9 = arith.cmpi eq, %arg2, %c0_i32_8 : i32
    %10 = arith.extui %9 : i1 to i32
    %c0_i32_9 = arith.constant 0 : i32
    %11 = arith.cmpi ne, %10, %c0_i32_9 : i32
    scf.if %11 {
      %c0_10 = arith.constant 0 : index
      %c0_11 = arith.constant 0 : index
      %12 = vector.load %arg6[%c0_10, %c0_11] : memref<8x128xf32, #tpu.memory_space<vmem>>, vector<8x128xf32>
      %c0_12 = arith.constant 0 : index
      %c0_13 = arith.constant 0 : index
      %13 = vector.load %arg5[%c0_12, %c0_13] : memref<1x128xf32, #tpu.memory_space<vmem>>, vector<1x128xf32>
      %14 = vector.broadcast %13 : vector<1x128xf32> to vector<8x128xf32>
      %15 = arith.addf %12, %14 : vector<8x128xf32>
      %cst_14 = arith.constant 0.000000e+00 : f32
      %16 = vector.broadcast %cst_14 : f32 to vector<8x128xf32>
      %17 = arith.maximumf %15, %16 : vector<8x128xf32>
      %c0_15 = arith.constant 0 : index
      %c0_16 = arith.constant 0 : index
      %18 = vector.load %arg6[%c0_15, %c0_16] : memref<8x128xf32, #tpu.memory_space<vmem>>, vector<8x128xf32>
      tpu.vector_store %arg6[%c0_15, %c0_16], %17 {strides = array<i32>} : memref<8x128xf32, #tpu.memory_space<vmem>>, vector<8x128xf32>,
    } else {
    }
    return
  }
  func.func @transform_0(%arg0: i32, %arg1: i32, %arg2: i32) -> (i32, i32) {
    %c0_i32 = arith.constant 0 : i32
    return %arg0, %arg2 : i32, i32
  }
  func.func @transform_1(%arg0: i32, %arg1: i32, %arg2: i32) -> (i32, i32) {
    %c0_i32 = arith.constant 0 : i32
    return %arg1, %arg2 : i32, i32
  }
  func.func @transform_2(%arg0: i32, %arg1: i32, %arg2: i32) -> (i32, i32) {
    %c0_i32 = arith.constant 0 : i32
    %c0_i32_0 = arith.constant 0 : i32
    return %c0_i32, %arg1 : i32, i32
  }
  func.func @transform_3(%arg0: i32, %arg1: i32, %arg2: i32) -> (i32, i32) {
    %c0_i32 = arith.constant 0 : i32
    return %arg0, %arg1 : i32, i32
  }
}

</mosaic_0001>

<bundles_post_ra>
// kernel: tpu_custom_call.1
= control target key start
LH: loop header
LB: loop body
LE: loop exit
PB: predicated region body
PF: predicated region fallthrough
CT: control target
= control target key end

     0   :  { %8 = vsyncpa [#allocation3], 0  ;;  %s434_s0 = inlined_call_operand.hbm [shape: f32[8,128], index: 0, kind: input, shape index: {}]   ;;  %s435_s1 = inlined_call_operand.hbm [shape: f32[128,128], index: 1, kind: input, shape index: {}]   ;;  %s436_s2 = inlined_call_operand.hbm [shape: f32[1,128], index: 2, kind: input, shape index: {}]   ;;  %s437_s3 = inlined_call_operand.hbm [shape: f32[8,128], index: 3, kind: output, shape index: {}]  }
   0x1   :  { %9 = vsyncpa [#allocation6], 0 }
   0x2   :  { %10 = vsyncpa [#allocation4], 0  ;;  %s357_s12 = smov [#allocation5]   ;;  %s263_s16 = scalar_lea.hbm %s435_s1, 2048 }
   0x3   :  { %s26_s13 = sshll.u32 %s357_s12, 4  ;;  %p264_p0 = scmp.ne.s32.totalorder %s435_s1, %s263_s16  ;;  %s27_s13 = int_to_ptr.vmem [resolvable:$true] %s26_s13 }
   0x4   :  { %p267_p1 = scmp.lt.u32.totalorder %s263_s16, %s435_s1 }
   0x6   :  { %p269_p2 = pnand %p267_p1, %p264_p0 }
   0x8   :  { %272 = shalt.err (!%p269_p2)
}
   0x9   :  { %s273_s21 = scalar_lea.vmem %s27_s13, 2048  ;;  %p278_p4 = scmp.lt.s32.totalorder %s27_s13, %s27_s13 }
   0xa   :  { %p274_p3 = scmp.ne.s32.totalorder %s27_s13, %s273_s21  ;;  %p279_p5 = scmp.lt.s32.totalorder %s273_s21, %s273_s21 }
   0xc   :  { %p280_p6 = por %p279_p5, %p278_p4 }
   0xe   :  { %p281_p7 = pnand %p280_p6, %p274_p3 }
  0x10   :  { %284 = shalt.err (!%p281_p7)
}
  0x11   :  { %s358_s22 = smov 128   ;;  %s359_s23 = smov 8  }
  0x12   :  { %32 = dma.hbm_to_vmem [thread:$0]  %s435_s1, 2048, %s27_s13, [#allocation6], %s358_s22, %s358_s22, %s359_s23  }
  0x13   :  { %s360_s26 = smov [#allocation2]   ;;  %s361_s28 = smov [#allocation7]  }
  0x14   :  { %s17_s27 = sshll.u32 %s360_s26, 4  ;;  %s39_s29 = sshll.u32 %s361_s28, 4  ;;  %s18_s27 = int_to_ptr.vmem [resolvable:$true] %s17_s27  ;;  %s40_s29 = int_to_ptr.vmem [resolvable:$true] %s39_s29 }
  0x15   :  { %s285_s5 = scalar_lea.hbm %s434_s0, 128 }
  0x16   :  { %p286_p8 = scmp.ne.s32.totalorder %s434_s0, %s285_s5  ;;  %p289_p9 = scmp.lt.u32.totalorder %s285_s5, %s434_s0 }
  0x18   :  { %p291_p10 = pnand %p289_p9, %p286_p8 }
  0x1a   :  { %294 = shalt.err (!%p291_p10)
}
  0x1b   :  { %s295_s1 = scalar_lea.vmem %s18_s27, 128  ;;  %p300_p12 = scmp.lt.s32.totalorder %s18_s27, %s18_s27 }
  0x1c   :  { %p296_p11 = scmp.ne.s32.totalorder %s18_s27, %s295_s1  ;;  %p301_p13 = scmp.lt.s32.totalorder %s295_s1, %s295_s1 }
  0x1e   :  { %p302_p0 = por %p301_p13, %p300_p12 }
  0x20   :  { %p303_p1 = pnand %p302_p0, %p296_p11 }
  0x22   :  { %306 = shalt.err (!%p303_p1)
}
  0x23   :  { %20 = dma.hbm_to_vmem [thread:$0]  %s434_s0, 128, %s18_s27, [#allocation3]  }
  0x24   :  { %s307_s14 = scalar_lea.hbm %s436_s2, 16 }
  0x25   :  { %p308_p2 = scmp.ne.s32.totalorder %s436_s2, %s307_s14  ;;  %p311_p3 = scmp.lt.u32.totalorder %s307_s14, %s436_s2 }
  0x27   :  { %p313_p4 = pnand %p311_p3, %p308_p2 }
  0x29   :  { %316 = shalt.err (!%p313_p4)
}
  0x2a   :  { %s317_s19 = scalar_lea.vmem %s40_s29, 16  ;;  %s321_s20 = scalar_lea.vmem %s40_s29, 32 }
  0x2b   :  { %p318_p5 = scmp.ne.s32.totalorder %s40_s29, %s317_s19  ;;  %p322_p6 = scmp.lt.s32.totalorder %s40_s29, %s40_s29 }
  0x2c   :  { %p323_p7 = scmp.lt.s32.totalorder %s321_s20, %s317_s19 }
  0x2e   :  { %p324_p8 = por %p323_p7, %p322_p6 }
  0x30   :  { %p325_p9 = pnand %p324_p8, %p318_p5 }
  0x32   :  { %328 = shalt.err (!%p325_p9)
}
  0x33   :  { %42 = dma.hbm_to_vmem [thread:$0]  %s436_s2, 16, %s40_s29, [#allocation6]  }
  0x34   :  { %351 = dma.done.wait [#allocation3], 128  }
  0x35   :  { %352 = vsyncadd [#allocation3], 4294967168 }
  0x36   :  { %353 = dma.done.wait [#allocation6], 2064  }
  0x37   :  { %354 = vsyncadd [#allocation6], 4294965232  ;;  %v362_v0 = vmov 0.0|0.0   ;;  %vm363_vm0 = vmmov 0   ;;  %v364_v1 = vmov 0.0   ;;  %v59_v2 = vld [vmem:[#allocation5] sm:$0xff] }
  0x38   :  { %230 = vmatprep.subr.bf16.mxu0 %v362_v0  ;;  %227 = vmatprep.mubr.msk.f32.mxu0 %vm363_vm0, %v364_v1  ;;  %v60_v3 = vld [vmem:[#allocation5 + $0x8] sm:$0xff]  ;;  %v61_v5 = vld [vmem:[#allocation5 + $0x10] sm:$0xff]  ;;  %v62_v6 = vld [vmem:[#allocation5 + $0x18] sm:$0xff]  ;;  %s365_s2 = smov [#allocation8]  }
  0x39   :  { %v231_v4 = vpack.c.bf16 %v60_v3, %v59_v2  ;;  %v234_v7 = vpack.c.bf16 %v62_v6, %v61_v5  ;;  %v63_v8 = vld [vmem:[#allocation5 + $0x20] sm:$0xff]  ;;  %v64_v9 = vld [vmem:[#allocation5 + $0x28] sm:$0xff]  ;;  %v65_v11 = vld [vmem:[#allocation5 + $0x30] sm:$0xff]  ;;  %s167_s22 = sshll.u32 %s365_s2, 4  ;;  %s168_s22 = int_to_ptr.vmem [resolvable:$true] %s167_s22 }
  0x3a   :  { %v237_v10 = vpack.c.bf16 %v64_v9, %v63_v8  ;;  %v66_v12 = vld [vmem:[#allocation5 + $0x38] sm:$0xff]  ;;  %v67_v14 = vld [vmem:[#allocation5 + $0x40] sm:$0xff]  ;;  %v68_v15 = vld [vmem:[#allocation5 + $0x48] sm:$0xff]  ;;  %s329_s23 = scalar_lea.vmem %s168_s22, 128  ;;  %p334_p11 = scmp.lt.s32.totalorder %s168_s22, %s168_s22 }
  0x3b   :  { %232 = vmatpush3.bf16.xpose.msra.mxu0 %v231_v4  ;;  %v240_v13 = vpack.c.bf16 %v66_v12, %v65_v11  ;;  %v243_v16 = vpack.c.bf16 %v68_v15, %v67_v14  ;;  %v69_v17 = vld [vmem:[#allocation5 + $0x50] sm:$0xff]  ;;  %v70_v18 = vld [vmem:[#allocation5 + $0x58] sm:$0xff]  ;;  %v71_v20 = vld [vmem:[#allocation5 + $0x60] sm:$0xff]  ;;  %p330_p10 = scmp.ne.s32.totalorder %s168_s22, %s329_s23  ;;  %p335_p12 = scmp.lt.s32.totalorder %s329_s23, %s329_s23 }
  0x3c   :  { %233 = vmatprep.subr.bf16.mxu0 %v362_v0  ;;  %v246_v19 = vpack.c.bf16 %v70_v18, %v69_v17  ;;  %v72_v21 = vld [vmem:[#allocation5 + $0x68] sm:$0xff]  ;;  %v73_v23 = vld [vmem:[#allocation5 + $0x70] sm:$0xff]  ;;  %v74_v24 = vld [vmem:[#allocation5 + $0x78] sm:$0xff] }
  0x3d   :  { %v249_v22 = vpack.c.bf16 %v72_v21, %v71_v20  ;;  %v252_v25 = vpack.c.bf16 %v74_v24, %v73_v23  ;;  %v58_v26 = vld [vmem:[#allocation2] sm:$0xff]  ;;  %v177_v28 = vld [vmem:[#allocation7] ss:$0 sm:$0xff]  ;;  %p336_p13 = por %p335_p12, %p334_p11 }
  0x3f   :  { %p337_p0 = pnand %p336_p13, %p330_p10 }
  0x43   :  { %235 = vmatpush3.bf16.xpose.msra.mxu0 %v234_v7 }
  0x44   :  { %236 = vmatprep.subr.bf16.mxu0 %v362_v0 }
  0x4b   :  { %238 = vmatpush3.bf16.xpose.msra.mxu0 %v237_v10 }
  0x4c   :  { %239 = vmatprep.subr.bf16.mxu0 %v362_v0 }
  0x53   :  { %241 = vmatpush3.bf16.xpose.msra.mxu0 %v240_v13 }
  0x54   :  { %242 = vmatprep.subr.bf16.mxu0 %v362_v0 }
  0x5b   :  { %244 = vmatpush3.bf16.xpose.msra.mxu0 %v243_v16 }
  0x5c   :  { %245 = vmatprep.subr.bf16.mxu0 %v362_v0 }
  0x63   :  { %247 = vmatpush3.bf16.xpose.msra.mxu0 %v246_v19 }
  0x64   :  { %248 = vmatprep.subr.bf16.mxu0 %v362_v0 }
  0x6b   :  { %250 = vmatpush3.bf16.xpose.msra.mxu0 %v249_v22 }
  0x6c   :  { %251 = vmatprep.subr.bf16.mxu0 %v362_v0 }
  0x73   :  { %253 = vmatpush3.bf16.xpose.msra.mxu0 %v252_v25 }
  0x7a   :  { %228 = vmatmul.mubr.f32.vlgmr.msra.gmra.mrb[0].mxu0 %v58_v26 }
 0x14d   :  { %v141_v27 = vpop.f32.mrb[0].mxu0 }
 0x14e   :  { %v229_v29 = vpop.f32.mrb[1].mxu0  ;;  %v158_v30 = vadd.f32 %v177_v28, %v141_v27 }
 0x150   :  { %v159_v31 = vmax.f32 %v158_v30, 0.0 }
 0x152   :  { %160 = vst [vmem:[#allocation8] sm:$0xff] %v159_v31 }
 0x153   :  { %340 = shalt.err (!%p337_p0)
}
 0x154   :  { %s341_s26 = scalar_lea.hbm %s437_s3, 128 }
 0x155   :  { %p342_p1 = scmp.ne.s32.totalorder %s437_s3, %s341_s26  ;;  %p345_p2 = scmp.lt.u32.totalorder %s341_s26, %s437_s3 }
 0x157   :  { %p347_p3 = pnand %p345_p2, %p342_p1 }
 0x159   :  { %350 = shalt.err (!%p347_p3)
}
 0x15a   :  { %170 = dma.vmem_to_hbm [thread:$0]  %s168_s22, 128, %s437_s3, [#allocation4]  }
 0x15b   :  { %355 = dma.done.wait [#allocation4], 128  }
 0x15c   :  { %356 = vsyncadd [#allocation4], 4294967168 }
 0x15d   :  { %174 = vsyncpa [#allocation3], 1 }
 0x15e   :  { %175 = vsyncpa [#allocation6], 1 }
 0x15f   :  { %176 = vsyncpa [#allocation4], 1 }

</bundles_post_ra>
